<compile_context>
chip_gen: v7x
topology: tpu7x:2x2x1
jax: 0.10.0
libtpu: 0.0.40
codegen_flags: <defaults>
</compile_context>

<pallas_src>
import functools

import jax
import jax.numpy as jnp
from jax.experimental import pallas as pl
from jax.experimental.pallas import tpu as pltpu

LANE = 128      # vreg lane width (last dim)
SUBLANE = 8     # vreg sublane width (second-to-last dim)


def _round_up(n, m):
    return ((n + m - 1) // m) * m


# ---------------------------------------------------------------------------
# Fully fused forward kernel: chained (x @ W + b) -> LeakyReLU, all in VMEM.
#   refs = (x, w0, b0, w1, b1, ..., w_{L-1}, b_{L-1}, recon_out, code_out)
#   slopes[l] is the LeakyReLU negative_slope for layer l (None = no act).
#   code_index marks the layer whose output is the latent code.
# ---------------------------------------------------------------------------
def _fused_ae_kernel(*refs, slopes, code_index):
    num_layers = len(slopes)
    x_ref = refs[0]
    wb_refs = refs[1:1 + 2 * num_layers]
    recon_ref = refs[1 + 2 * num_layers]
    code_ref = refs[2 + 2 * num_layers]

    h = x_ref[...]                                    # (TB, D_in_pad) f32
    for l in range(num_layers):                       # statically unrolled
        w = wb_refs[2 * l][...]                       # (D_in_pad, D_out_pad)
        b = wb_refs[2 * l + 1][...]                   # (1, D_out_pad)
        y = jnp.dot(h, w, preferred_element_type=jnp.float32) + b
        s = slopes[l]
        if s is not None:
            y = jnp.where(y >= 0.0, y, s * y)         # LeakyReLU(negative_slope=s)
        h = y
        if l == code_index:
            code_ref[...] = h.astype(code_ref.dtype)  # lane-dense 128-wide store
    recon_ref[...] = h.astype(recon_ref.dtype)        # lane-dense 128-wide store


def _fused_forward(x_pad, padded_wb, slopes, code_index, batch_tile):
    """Run the fused autoencoder on padded operands. Returns padded outputs."""
    B_pad, D_in_pad = x_pad.shape
    num_layers = len(slopes)
    d_code_pad = padded_wb[code_index][0].shape[1]
    d_out_pad = padded_wb[-1][0].shape[1]

    grid = (B_pad // batch_tile,)

    in_specs = [pl.BlockSpec((batch_tile, D_in_pad), lambda i: (i, 0))]
    flat_wb = []
    for w_p, b_p in padded_wb:
        in_specs.append(pl.BlockSpec(w_p.shape, lambda i: (0, 0)))
        in_specs.append(pl.BlockSpec(b_p.shape, lambda i: (0, 0)))
        flat_wb += [w_p, b_p]

    out_specs = [
        pl.BlockSpec((batch_tile, d_out_pad), lambda i: (i, 0)),
        pl.BlockSpec((batch_tile, d_code_pad), lambda i: (i, 0)),
    ]
    out_shape = [
        jax.ShapeDtypeStruct((B_pad, d_out_pad), jnp.float32),
        jax.ShapeDtypeStruct((B_pad, d_code_pad), jnp.float32),
    ]

    kernel = functools.partial(
        _fused_ae_kernel, slopes=tuple(slopes), code_index=code_index)

    recon_pad, code_pad = pl.pallas_call(
        kernel,
        out_shape=out_shape,
        grid=grid,
        in_specs=in_specs,
        out_specs=out_specs,
        compiler_params=pltpu.CompilerParams(
            dimension_semantics=("parallel",),   # batch axis -> megacore on v7x
        ),
    )(x_pad, *flat_wb)
    return recon_pad, code_pad


# ---------------------------------------------------------------------------
# Forward pass wrapper: build the layer schedule, zero-pad to TPU-friendly
# shapes, run the single fused kernel, slice real rows/lanes back out.
# ---------------------------------------------------------------------------
def ae_synth_forward(params, x, *, batch_tile=None):
    # Layer schedule: (w, b, leaky_relu_slope or None).
    layers = []
    for w, b in params["enc"]:
        layers.append((w, b, 0.01))                    # nn.LeakyReLU() default
    cw, cb = params["code"]
    code_index = len(layers)
    layers.append((cw, cb, None))                      # code linear, no act
    ndec = len(params["dec"])
    for i, (w, b) in enumerate(params["dec"]):
        slope = 0.01 if (i + 1) < ndec else 0.1        # final: LeakyReLU(0.1)
        layers.append((w, b, slope))

    B, D_in = x.shape
    latent_dims = cw.shape[1]
    d_out = layers[-1][0].shape[1]

    # Batch padding / tiling (sublane multiple, parallel grid axis).
    B_pad = _round_up(B, SUBLANE)
    if batch_tile is None:
        batch_tile = min(B_pad, 256)
    batch_tile = _round_up(batch_tile, SUBLANE)
    B_pad = _round_up(B_pad, batch_tile)

    # Lane-dense feature padding (zeros are inert for Linear + LeakyReLU).
    D_in_pad = _round_up(D_in, LANE)
    x_pad = jnp.zeros((B_pad, D_in_pad), jnp.float32).at[:B, :D_in].set(x)

    padded_wb, slopes = [], []
    for w, b, s in layers:
        di, do = w.shape
        di_p, do_p = _round_up(di, LANE), _round_up(do, LANE)
        w_p = jnp.zeros((di_p, do_p), jnp.float32).at[:di, :do].set(w)
        b_p = jnp.zeros((1, do_p), jnp.float32).at[:, :do].set(b)
        padded_wb.append((w_p, b_p))
        slopes.append(s)

    recon_pad, code_pad = _fused_forward(
        x_pad, padded_wb, slopes, code_index, batch_tile)

    recon_x = recon_pad[:B, :d_out]
    code = code_pad[:B, :latent_dims]
    return recon_x, code


ae_synth_forward_jit = jax.jit(ae_synth_forward, static_argnames=("batch_tile",))


# ---------------------------------------------------------------------------
# Deterministic parameter construction (PyTorch nn.Linear default init:
# U(-1/sqrt(fan_in), 1/sqrt(fan_in)) for both weight and bias).
# ---------------------------------------------------------------------------
def _init_linear(key, d_in, d_out):
    kw, kb = jax.random.split(key)
    bound = 1.0 / jnp.sqrt(jnp.float32(d_in))
    # Stored already transposed: (d_in, d_out) so the kernel does x @ W.
    w = jax.random.uniform(kw, (d_in, d_out), jnp.float32, -bound, bound)
    b = jax.random.uniform(kb, (1, d_out), jnp.float32, -bound, bound)
    return w, b


def make_ae_params(key, layer_dims_enc, layer_dims_dec, latent_dims):
    params = {"enc": [], "code": None, "dec": []}
    for d_in, d_out in zip(layer_dims_enc[:-1], layer_dims_enc[1:]):
        key, sub = jax.random.split(key)
        params["enc"].append(_init_linear(sub, d_in, d_out))
    key, sub = jax.random.split(key)
    params["code"] = _init_linear(sub, layer_dims_enc[-1], latent_dims)
    for d_in, d_out in zip(layer_dims_dec[:-1], layer_dims_dec[1:]):
        key, sub = jax.random.split(key)
        params["dec"].append(_init_linear(sub, d_in, d_out))
    return params


# ---------------------------------------------------------------------------
# Pure-JAX reference for correctness checking.
# ---------------------------------------------------------------------------
def ae_synth_ref(params, x):
    def lrelu(v, s):
        return jnp.where(v >= 0.0, v, s * v)

    h = x
    for w, b in params["enc"]:
        h = lrelu(h @ w + b, 0.01)
    cw, cb = params["code"]
    code = h @ cw + cb
    h = code
    ndec = len(params["dec"])
    for i, (w, b) in enumerate(params["dec"]):
        s = 0.01 if (i + 1) < ndec else 0.1
        h = lrelu(h @ w + b, s)
    return h, code


if __name__ == "__main__":
    # Small shapes consistent with the module: flat feature vectors.
    batch = 8
    layer_dims_enc = [16, 32, 32]      # input dim 16, two hidden layers
    latent_dims = 2
    layer_dims_dec = [2, 32, 32, 16]   # latent 2 -> ... -> reconstruct 16

    key = jax.random.PRNGKey(0)
    pkey, xkey = jax.random.split(key)
    params = make_ae_params(pkey, layer_dims_enc, layer_dims_dec, latent_dims)
    x = jax.random.normal(xkey, (batch, layer_dims_enc[0]), jnp.float32)

    recon_x, code = ae_synth_forward_jit(params, x)
    jax.block_until_ready(recon_x)
    jax.block_until_ready(code)

    recon_ref, code_ref = ae_synth_ref(params, x)
    assert recon_x.shape == (batch, layer_dims_dec[-1])
    assert code.shape == (batch, latent_dims)
    assert jnp.allclose(recon_x, recon_ref, atol=1e-5, rtol=1e-5)
    assert jnp.allclose(code, code_ref, atol=1e-5, rtol=1e-5)

    print("KERNEL_OK")
</pallas_src>

<mosaic_0001>
module attributes {stable_mosaic.version = 11 : i64} {
  func.func @_fused_ae_kernel(%arg0: i32, %arg1: memref<8x128xf32, #tpu.memory_space<vmem>>, %arg2: memref<128x128xf32, #tpu.memory_space<vmem>>, %arg3: memref<1x128xf32, #tpu.memory_space<vmem>>, %arg4: memref<128x128xf32, #tpu.memory_space<vmem>>, %arg5: memref<1x128xf32, #tpu.memory_space<vmem>>, %arg6: memref<128x128xf32, #tpu.memory_space<vmem>>, %arg7: memref<1x128xf32, #tpu.memory_space<vmem>>, %arg8: memref<128x128xf32, #tpu.memory_space<vmem>>, %arg9: memref<1x128xf32, #tpu.memory_space<vmem>>, %arg10: memref<128x128xf32, #tpu.memory_space<vmem>>, %arg11: memref<1x128xf32, #tpu.memory_space<vmem>>, %arg12: memref<128x128xf32, #tpu.memory_space<vmem>>, %arg13: memref<1x128xf32, #tpu.memory_space<vmem>>, %arg14: memref<8x128xf32, #tpu.memory_space<vmem>>, %arg15: memref<8x128xf32, #tpu.memory_space<vmem>>) attributes {dimension_semantics = [#tpu.dimension_semantics<parallel>], iteration_bounds = array<i64: 1>, scalar_prefetch = 0 : i64, scratch_operands = 0 : i64, tpu.core_type = #tpu.core_type<tc>, window_params = [{transform_indices = @transform_0, window_bounds = array<i64: 8, 128>}, {pipeline_mode = #tpu.pipeline_mode<synchronous>, transform_indices = @transform_1, window_bounds = array<i64: 128, 128>}, {pipeline_mode = #tpu.pipeline_mode<synchronous>, transform_indices = @transform_2, window_bounds = array<i64: 1, 128>}, {pipeline_mode = #tpu.pipeline_mode<synchronous>, transform_indices = @transform_3, window_bounds = array<i64: 128, 128>}, {pipeline_mode = #tpu.pipeline_mode<synchronous>, transform_indices = @transform_4, window_bounds = array<i64: 1, 128>}, {pipeline_mode = #tpu.pipeline_mode<synchronous>, transform_indices = @transform_5, window_bounds = array<i64: 128, 128>}, {pipeline_mode = #tpu.pipeline_mode<synchronous>, transform_indices = @transform_6, window_bounds = array<i64: 1, 128>}, {pipeline_mode = #tpu.pipeline_mode<synchronous>, transform_indices = @transform_7, window_bounds = array<i64: 128, 128>}, {pipeline_mode = #tpu.pipeline_mode<synchronous>, transform_indices = @transform_8, window_bounds = array<i64: 1, 128>}, {pipeline_mode = #tpu.pipeline_mode<synchronous>, transform_indices = @transform_9, window_bounds = array<i64: 128, 128>}, {pipeline_mode = #tpu.pipeline_mode<synchronous>, transform_indices = @transform_10, window_bounds = array<i64: 1, 128>}, {pipeline_mode = #tpu.pipeline_mode<synchronous>, transform_indices = @transform_11, window_bounds = array<i64: 128, 128>}, {pipeline_mode = #tpu.pipeline_mode<synchronous>, transform_indices = @transform_12, window_bounds = array<i64: 1, 128>}, {transform_indices = @transform_13, window_bounds = array<i64: 8, 128>}, {transform_indices = @transform_14, window_bounds = array<i64: 8, 128>}]} {
    %c0 = arith.constant 0 : index
    %c0_0 = arith.constant 0 : index
    %0 = vector.load %arg1[%c0, %c0_0] : memref<8x128xf32, #tpu.memory_space<vmem>>, vector<8x128xf32>
    %c0_1 = arith.constant 0 : index
    %c0_2 = arith.constant 0 : index
    %1 = vector.load %arg2[%c0_1, %c0_2] : memref<128x128xf32, #tpu.memory_space<vmem>>, vector<128x128xf32>
    %c0_3 = arith.constant 0 : index
    %c0_4 = arith.constant 0 : index
    %2 = vector.load %arg3[%c0_3, %c0_4] : memref<1x128xf32, #tpu.memory_space<vmem>>, vector<1x128xf32>
    %cst = arith.constant dense<0.000000e+00> : vector<8x128xf32>
    %3 = tpu.matmul %0, %1, %cst {dimension_numbers = #tpu.dot_dimension_numbers<[1], [0], [0], [1], [0, 0, 1, 1], [], []>} : vector<8x128xf32>, vector<128x128xf32>, vector<8x128xf32> -> vector<8x128xf32>
    %4 = vector.broadcast %2 : vector<1x128xf32> to vector<8x128xf32>
    %5 = arith.addf %3, %4 : vector<8x128xf32>
    %cst_5 = arith.constant 0.000000e+00 : f32
    %6 = vector.broadcast %cst_5 : f32 to vector<8x128xf32>
    %7 = arith.cmpf oge, %5, %6 : vector<8x128xf32>
    %cst_6 = arith.constant 0.00999999977 : f32
    %8 = vector.broadcast %cst_6 : f32 to vector<8x128xf32>
    %9 = arith.mulf %8, %5 : vector<8x128xf32>
    %10 = arith.select %7, %5, %9 : vector<8x128xi1>, vector<8x128xf32>
    %c0_7 = arith.constant 0 : index
    %c0_8 = arith.constant 0 : index
    %11 = vector.load %arg4[%c0_7, %c0_8] : memref<128x128xf32, #tpu.memory_space<vmem>>, vector<128x128xf32>
    %c0_9 = arith.constant 0 : index
    %c0_10 = arith.constant 0 : index
    %12 = vector.load %arg5[%c0_9, %c0_10] : memref<1x128xf32, #tpu.memory_space<vmem>>, vector<1x128xf32>
    %cst_11 = arith.constant dense<0.000000e+00> : vector<8x128xf32>
    %13 = tpu.matmul %10, %11, %cst_11 {dimension_numbers = #tpu.dot_dimension_numbers<[1], [0], [0], [1], [0, 0, 1, 1], [], []>} : vector<8x128xf32>, vector<128x128xf32>, vector<8x128xf32> -> vector<8x128xf32>
    %14 = vector.broadcast %12 : vector<1x128xf32> to vector<8x128xf32>
    %15 = arith.addf %13, %14 : vector<8x128xf32>
    %cst_12 = arith.constant 0.000000e+00 : f32
    %16 = vector.broadcast %cst_12 : f32 to vector<8x128xf32>
    %17 = arith.cmpf oge, %15, %16 : vector<8x128xf32>
    %cst_13 = arith.constant 0.00999999977 : f32
    %18 = vector.broadcast %cst_13 : f32 to vector<8x128xf32>
    %19 = arith.mulf %18, %15 : vector<8x128xf32>
    %20 = arith.select %17, %15, %19 : vector<8x128xi1>, vector<8x128xf32>
    %c0_14 = arith.constant 0 : index
    %c0_15 = arith.constant 0 : index
    %21 = vector.load %arg6[%c0_14, %c0_15] : memref<128x128xf32, #tpu.memory_space<vmem>>, vector<128x128xf32>
    %c0_16 = arith.constant 0 : index
    %c0_17 = arith.constant 0 : index
    %22 = vector.load %arg7[%c0_16, %c0_17] : memref<1x128xf32, #tpu.memory_space<vmem>>, vector<1x128xf32>
    %cst_18 = arith.constant dense<0.000000e+00> : vector<8x128xf32>
    %23 = tpu.matmul %20, %21, %cst_18 {dimension_numbers = #tpu.dot_dimension_numbers<[1], [0], [0], [1], [0, 0, 1, 1], [], []>} : vector<8x128xf32>, vector<128x128xf32>, vector<8x128xf32> -> vector<8x128xf32>
    %24 = vector.broadcast %22 : vector<1x128xf32> to vector<8x128xf32>
    %25 = arith.addf %23, %24 : vector<8x128xf32>
    %c0_19 = arith.constant 0 : index
    %c0_20 = arith.constant 0 : index
    %26 = vector.load %arg15[%c0_19, %c0_20] : memref<8x128xf32, #tpu.memory_space<vmem>>, vector<8x128xf32>
    tpu.vector_store %arg15[%c0_19, %c0_20], %25 {strides = array<i32>} : memref<8x128xf32, #tpu.memory_space<vmem>>, vector<8x128xf32>,
    %c0_21 = arith.constant 0 : index
    %c0_22 = arith.constant 0 : index
    %27 = vector.load %arg8[%c0_21, %c0_22] : memref<128x128xf32, #tpu.memory_space<vmem>>, vector<128x128xf32>
    %c0_23 = arith.constant 0 : index
    %c0_24 = arith.constant 0 : index
    %28 = vector.load %arg9[%c0_23, %c0_24] : memref<1x128xf32, #tpu.memory_space<vmem>>, vector<1x128xf32>
    %cst_25 = arith.constant dense<0.000000e+00> : vector<8x128xf32>
    %29 = tpu.matmul %25, %27, %cst_25 {dimension_numbers = #tpu.dot_dimension_numbers<[1], [0], [0], [1], [0, 0, 1, 1], [], []>} : vector<8x128xf32>, vector<128x128xf32>, vector<8x128xf32> -> vector<8x128xf32>
    %30 = vector.broadcast %28 : vector<1x128xf32> to vector<8x128xf32>
    %31 = arith.addf %29, %30 : vector<8x128xf32>
    %cst_26 = arith.constant 0.000000e+00 : f32
    %32 = vector.broadcast %cst_26 : f32 to vector<8x128xf32>
    %33 = arith.cmpf oge, %31, %32 : vector<8x128xf32>
    %cst_27 = arith.constant 0.00999999977 : f32
    %34 = vector.broadcast %cst_27 : f32 to vector<8x128xf32>
    %35 = arith.mulf %34, %31 : vector<8x128xf32>
    %36 = arith.select %33, %31, %35 : vector<8x128xi1>, vector<8x128xf32>
    %c0_28 = arith.constant 0 : index
    %c0_29 = arith.constant 0 : index
    %37 = vector.load %arg10[%c0_28, %c0_29] : memref<128x128xf32, #tpu.memory_space<vmem>>, vector<128x128xf32>
    %c0_30 = arith.constant 0 : index
    %c0_31 = arith.constant 0 : index
    %38 = vector.load %arg11[%c0_30, %c0_31] : memref<1x128xf32, #tpu.memory_space<vmem>>, vector<1x128xf32>
    %cst_32 = arith.constant dense<0.000000e+00> : vector<8x128xf32>
    %39 = tpu.matmul %36, %37, %cst_32 {dimension_numbers = #tpu.dot_dimension_numbers<[1], [0], [0], [1], [0, 0, 1, 1], [], []>} : vector<8x128xf32>, vector<128x128xf32>, vector<8x128xf32> -> vector<8x128xf32>
    %40 = vector.broadcast %38 : vector<1x128xf32> to vector<8x128xf32>
    %41 = arith.addf %39, %40 : vector<8x128xf32>
    %cst_33 = arith.constant 0.000000e+00 : f32
    %42 = vector.broadcast %cst_33 : f32 to vector<8x128xf32>
    %43 = arith.cmpf oge, %41, %42 : vector<8x128xf32>
    %cst_34 = arith.constant 0.00999999977 : f32
    %44 = vector.broadcast %cst_34 : f32 to vector<8x128xf32>
    %45 = arith.mulf %44, %41 : vector<8x128xf32>
    %46 = arith.select %43, %41, %45 : vector<8x128xi1>, vector<8x128xf32>
    %c0_35 = arith.constant 0 : index
    %c0_36 = arith.constant 0 : index
    %47 = vector.load %arg12[%c0_35, %c0_36] : memref<128x128xf32, #tpu.memory_space<vmem>>, vector<128x128xf32>
    %c0_37 = arith.constant 0 : index
    %c0_38 = arith.constant 0 : index
    %48 = vector.load %arg13[%c0_37, %c0_38] : memref<1x128xf32, #tpu.memory_space<vmem>>, vector<1x128xf32>
    %cst_39 = arith.constant dense<0.000000e+00> : vector<8x128xf32>
    %49 = tpu.matmul %46, %47, %cst_39 {dimension_numbers = #tpu.dot_dimension_numbers<[1], [0], [0], [1], [0, 0, 1, 1], [], []>} : vector<8x128xf32>, vector<128x128xf32>, vector<8x128xf32> -> vector<8x128xf32>
    %50 = vector.broadcast %48 : vector<1x128xf32> to vector<8x128xf32>
    %51 = arith.addf %49, %50 : vector<8x128xf32>
    %cst_40 = arith.constant 0.000000e+00 : f32
    %52 = vector.broadcast %cst_40 : f32 to vector<8x128xf32>
    %53 = arith.cmpf oge, %51, %52 : vector<8x128xf32>
    %cst_41 = arith.constant 1.000000e-01 : f32
    %54 = vector.broadcast %cst_41 : f32 to vector<8x128xf32>
    %55 = arith.mulf %54, %51 : vector<8x128xf32>
    %56 = arith.select %53, %51, %55 : vector<8x128xi1>, vector<8x128xf32>
    %c0_42 = arith.constant 0 : index
    %c0_43 = arith.constant 0 : index
    %57 = vector.load %arg14[%c0_42, %c0_43] : memref<8x128xf32, #tpu.memory_space<vmem>>, vector<8x128xf32>
    tpu.vector_store %arg14[%c0_42, %c0_43], %56 {strides = array<i32>} : memref<8x128xf32, #tpu.memory_space<vmem>>, vector<8x128xf32>,
    return
  }
  func.func @transform_0(%arg0: i32) -> (i32, i32) {
    %c0_i32 = arith.constant 0 : i32
    %c0_i32_0 = arith.constant 0 : i32
    return %arg0, %c0_i32 : i32, i32
  }
  func.func @transform_1(%arg0: i32) -> (i32, i32) {
    %c0_i32 = arith.constant 0 : i32
    %c0_i32_0 = arith.constant 0 : i32
    %c0_i32_1 = arith.constant 0 : i32
    return %c0_i32, %c0_i32_0 : i32, i32
  }
  func.func @transform_2(%arg0: i32) -> (i32, i32) {
    %c0_i32 = arith.constant 0 : i32
    %c0_i32_0 = arith.constant 0 : i32
    %c0_i32_1 = arith.constant 0 : i32
    return %c0_i32, %c0_i32_0 : i32, i32
  }
  func.func @transform_3(%arg0: i32) -> (i32, i32) {
    %c0_i32 = arith.constant 0 : i32
    %c0_i32_0 = arith.constant 0 : i32
    %c0_i32_1 = arith.constant 0 : i32
    return %c0_i32, %c0_i32_0 : i32, i32
  }
  func.func @transform_4(%arg0: i32) -> (i32, i32) {
    %c0_i32 = arith.constant 0 : i32
    %c0_i32_0 = arith.constant 0 : i32
    %c0_i32_1 = arith.constant 0 : i32
    return %c0_i32, %c0_i32_0 : i32, i32
  }
  func.func @transform_5(%arg0: i32) -> (i32, i32) {
    %c0_i32 = arith.constant 0 : i32
    %c0_i32_0 = arith.constant 0 : i32
    %c0_i32_1 = arith.constant 0 : i32
    return %c0_i32, %c0_i32_0 : i32, i32
  }
  func.func @transform_6(%arg0: i32) -> (i32, i32) {
    %c0_i32 = arith.constant 0 : i32
    %c0_i32_0 = arith.constant 0 : i32
    %c0_i32_1 = arith.constant 0 : i32
    return %c0_i32, %c0_i32_0 : i32, i32
  }
  func.func @transform_7(%arg0: i32) -> (i32, i32) {
    %c0_i32 = arith.constant 0 : i32
    %c0_i32_0 = arith.constant 0 : i32
    %c0_i32_1 = arith.constant 0 : i32
    return %c0_i32, %c0_i32_0 : i32, i32
  }
  func.func @transform_8(%arg0: i32) -> (i32, i32) {
    %c0_i32 = arith.constant 0 : i32
    %c0_i32_0 = arith.constant 0 : i32
    %c0_i32_1 = arith.constant 0 : i32
    return %c0_i32, %c0_i32_0 : i32, i32
  }
  func.func @transform_9(%arg0: i32) -> (i32, i32) {
    %c0_i32 = arith.constant 0 : i32
    %c0_i32_0 = arith.constant 0 : i32
    %c0_i32_1 = arith.constant 0 : i32
    return %c0_i32, %c0_i32_0 : i32, i32
  }
  func.func @transform_10(%arg0: i32) -> (i32, i32) {
    %c0_i32 = arith.constant 0 : i32
    %c0_i32_0 = arith.constant 0 : i32
    %c0_i32_1 = arith.constant 0 : i32
    return %c0_i32, %c0_i32_0 : i32, i32
  }
  func.func @transform_11(%arg0: i32) -> (i32, i32) {
    %c0_i32 = arith.constant 0 : i32
    %c0_i32_0 = arith.constant 0 : i32
    %c0_i32_1 = arith.constant 0 : i32
    return %c0_i32, %c0_i32_0 : i32, i32
  }
  func.func @transform_12(%arg0: i32) -> (i32, i32) {
    %c0_i32 = arith.constant 0 : i32
    %c0_i32_0 = arith.constant 0 : i32
    %c0_i32_1 = arith.constant 0 : i32
    return %c0_i32, %c0_i32_0 : i32, i32
  }
  func.func @transform_13(%arg0: i32) -> (i32, i32) {
    %c0_i32 = arith.constant 0 : i32
    %c0_i32_0 = arith.constant 0 : i32
    return %arg0, %c0_i32 : i32, i32
  }
  func.func @transform_14(%arg0: i32) -> (i32, i32) {
    %c0_i32 = arith.constant 0 : i32
    %c0_i32_0 = arith.constant 0 : i32
    return %arg0, %c0_i32 : i32, i32
  }
}

</mosaic_0001>

<bundles_post_ra>
// kernel: ae_synth_forward.1
= control target key start
LH: loop header
LB: loop body
LE: loop exit
PB: predicated region body
PF: predicated region fallthrough
CT: control target
= control target key end

     0   :  { %v1131_v3 = vmov 0.0|0.0   ;;  %vm1132_vm0 = vmmov 0   ;;  %v1133_v6 = vmov 0.0   ;;  %s1594_s0 = inlined_call_operand.vmem [shape: f32[8,128], index: 0, kind: input, shape index: {}]   ;;  %s1595_s1 = inlined_call_operand.vmem [shape: f32[128,128], index: 1, kind: input, shape index: {}]   ;;  %s1596_s2 = inlined_call_operand.vmem [shape: f32[1,128], index: 2, kind: input, shape index: {}]   ;;  %s1597_s3 = inlined_call_operand.vmem [shape: f32[128,128], index: 3, kind: input, shape index: {}]   ;;  %s1598_s4 = inlined_call_operand.vmem [shape: f32[1,128], index: 4, kind: input, shape index: {}]   ;;  %s1599_s5 = inlined_call_operand.vmem [shape: f32[128,128], index: 5, kind: input, shape index: {}]   ;;  %s1600_s6 = inlined_call_operand.vmem [shape: f32[1,128], index: 6, kind: input, shape index: {}]   ;;  %s1601_s7 = inlined_call_operand.vmem [shape: f32[128,128], index: 7, kind: input, shape index: {}]   ;;  %s1602_s8 = inlined_call_operand.vmem [shape: f32[1,128], index: 8, kind: input, shape index: {}]   ;;  %s1603_s9 = inlined_call_operand.vmem [shape: f32[128,128], index: 9, kind: input, shape index: {}]   ;;  %s1604_s10 = inlined_call_operand.vmem [shape: f32[1,128], index: 10, kind: input, shape index: {}]   ;;  %s1605_s11 = inlined_call_operand.vmem [shape: f32[128,128], index: 11, kind: input, shape index: {}]   ;;  %s1606_s12 = inlined_call_operand.vmem [shape: f32[1,128], index: 12, kind: input, shape index: {}]   ;;  %s1607_s13 = inlined_call_operand.hbm [shape: f32[8,128], index: 13, kind: output, shape index: {0}]   ;;  %s1608_s14 = inlined_call_operand.vmem [shape: f32[8,128], index: 14, kind: output, shape index: {1}]  }
   0x1   :  { %v48_v0 = vld [vmem:[%s1595_s1] sm:$0xff]  ;;  %v49_v1 = vld [vmem:[%s1595_s1 + $0x8] sm:$0xff]  ;;  %v50_v2 = vld [vmem:[%s1595_s1 + $0x10] sm:$0xff]  ;;  %959 = vmatprep.subr.bf16.mxu0 %v1131_v3  ;;  %781 = vmatprep.mubr.msk.f32.mxu0 %vm1132_vm0, %v1133_v6 }
   0x2   :  { %v960_v4 = vpack.c.bf16 %v49_v1, %v48_v0  ;;  %v51_v5 = vld [vmem:[%s1595_s1 + $0x18] sm:$0xff]  ;;  %983 = vmatprep.subr.bf16.mxu1 %v1131_v3  ;;  %816 = vmatprep.mubr.msk.f32.mxu1 %vm1132_vm0, %v1133_v6  ;;  %v52_v8 = vld [vmem:[%s1595_s1 + $0x20] sm:$0xff]  ;;  %v53_v9 = vld [vmem:[%s1595_s1 + $0x28] sm:$0xff] }
   0x3   :  { %v963_v7 = vpack.c.bf16 %v51_v5, %v50_v2  ;;  %v144_v10 = vld [vmem:[%s1597_s3] sm:$0xff]  ;;  %v145_v11 = vld [vmem:[%s1597_s3 + $0x8] sm:$0xff]  ;;  %v146_v12 = vld [vmem:[%s1597_s3 + $0x10] sm:$0xff]  ;;  %v966_v14 = vpack.c.bf16 %v53_v9, %v52_v8 }
   0x4   :  { %961 = vmatpush3.bf16.msra.mxu0 %v960_v4  ;;  %v147_v13 = vld [vmem:[%s1597_s3 + $0x18] sm:$0xff]  ;;  %v984_v15 = vpack.c.bf16 %v145_v11, %v144_v10  ;;  %v54_v16 = vld [vmem:[%s1595_s1 + $0x30] sm:$0xff]  ;;  %v148_v19 = vld [vmem:[%s1597_s3 + $0x20] sm:$0xff] }
   0x5   :  { %962 = vmatprep.subr.bf16.mxu0 %v1131_v3  ;;  %v55_v17 = vld [vmem:[%s1595_s1 + $0x38] sm:$0xff]  ;;  %v987_v18 = vpack.c.bf16 %v147_v13, %v146_v12  ;;  %v149_v20 = vld [vmem:[%s1597_s3 + $0x28] sm:$0xff] }
   0x6   :  { %985 = vmatpush3.bf16.msra.mxu1 %v984_v15 }
   0x7   :  { %986 = vmatprep.subr.bf16.mxu1 %v1131_v3 }
   0x8   :  { %964 = vmatpush3.bf16.msra.mxu0 %v963_v7 }
   0x9   :  { %965 = vmatprep.subr.bf16.mxu0 %v1131_v3 }
   0xa   :  { %20 = vsyncpa [#allocation3], 0  ;;  %v969_v21 = vpack.c.bf16 %v55_v17, %v54_v16  ;;  %v56_v22 = vld [vmem:[%s1595_s1 + $0x40] sm:$0xff]  ;;  %v57_v23 = vld [vmem:[%s1595_s1 + $0x48] sm:$0xff]  ;;  %988 = vmatpush3.bf16.msra.mxu1 %v987_v18  ;;  %v990_v24 = vpack.c.bf16 %v149_v20, %v148_v19 }
   0xb   :  { %989 = vmatprep.subr.bf16.mxu1 %v1131_v3  ;;  %v150_v25 = vld [vmem:[%s1597_s3 + $0x30] sm:$0xff]  ;;  %v151_v26 = vld [vmem:[%s1597_s3 + $0x38] sm:$0xff]  ;;  %v972_v27 = vpack.c.bf16 %v57_v23, %v56_v22  ;;  %v152_v31 = vld [vmem:[%s1597_s3 + $0x40] sm:$0xff] }
   0xc   :  { %967 = vmatpush3.bf16.msra.mxu0 %v966_v14  ;;  %v58_v28 = vld [vmem:[%s1595_s1 + $0x50] sm:$0xff]  ;;  %v59_v29 = vld [vmem:[%s1595_s1 + $0x58] sm:$0xff]  ;;  %v993_v30 = vpack.c.bf16 %v151_v26, %v150_v25  ;;  %v153_v32 = vld [vmem:[%s1597_s3 + $0x48] sm:$0xff] }
   0xd   :  { %968 = vmatprep.subr.bf16.mxu0 %v1131_v3  ;;  %v975_v33 = vpack.c.bf16 %v59_v29, %v58_v28  ;;  %v60_v34 = vld [vmem:[%s1595_s1 + $0x60] sm:$0xff]  ;;  %v61_v35 = vld [vmem:[%s1595_s1 + $0x68] sm:$0xff]  ;;  %v996_v36 = vpack.c.bf16 %v153_v32, %v152_v31  ;;  %v154_v37 = vld [vmem:[%s1597_s3 + $0x50] sm:$0xff] }
   0xe   :  { %991 = vmatpush3.bf16.msra.mxu1 %v990_v24  ;;  %v155_v38 = vld [vmem:[%s1597_s3 + $0x58] sm:$0xff]  ;;  %v978_v39 = vpack.c.bf16 %v61_v35, %v60_v34  ;;  %v62_v40 = vld [vmem:[%s1595_s1 + $0x70] sm:$0xff]  ;;  %v156_v43 = vld [vmem:[%s1597_s3 + $0x60] sm:$0xff] }
   0xf   :  { %992 = vmatprep.subr.bf16.mxu1 %v1131_v3  ;;  %v63_v41 = vld [vmem:[%s1595_s1 + $0x78] sm:$0xff]  ;;  %v999_v42 = vpack.c.bf16 %v155_v38, %v154_v37  ;;  %v157_v44 = vld [vmem:[%s1597_s3 + $0x68] sm:$0xff]  ;;  %v47_v47 = vld [vmem:[%s1594_s0] sm:$0xff] }
  0x10   :  { %970 = vmatpush3.bf16.msra.mxu0 %v969_v21  ;;  %v981_v45 = vpack.c.bf16 %v63_v41, %v62_v40  ;;  %v1002_v46 = vpack.c.bf16 %v157_v44, %v156_v43  ;;  %v158_v48 = vld [vmem:[%s1597_s3 + $0x70] sm:$0xff]  ;;  %v159_v49 = vld [vmem:[%s1597_s3 + $0x78] sm:$0xff]  ;;  %v240_v51 = vld [vmem:[%s1599_s5] sm:$0xff] }
  0x11   :  { %971 = vmatprep.subr.bf16.mxu0 %v1131_v3  ;;  %v1005_v50 = vpack.c.bf16 %v159_v49, %v158_v48  ;;  %v241_v52 = vld [vmem:[%s1599_s5 + $0x8] sm:$0xff]  ;;  %v242_v53 = vld [vmem:[%s1599_s5 + $0x10] sm:$0xff]  ;;  %v243_v55 = vld [vmem:[%s1599_s5 + $0x18] sm:$0xff] }
  0x12   :  { %994 = vmatpush3.bf16.msra.mxu1 %v993_v30  ;;  %v1008_v54 = vpack.c.bf16 %v241_v52, %v240_v51  ;;  %v1011_v56 = vpack.c.bf16 %v243_v55, %v242_v53  ;;  %v244_v57 = vld [vmem:[%s1599_s5 + $0x20] sm:$0xff]  ;;  %v245_v58 = vld [vmem:[%s1599_s5 + $0x28] sm:$0xff]  ;;  %v246_v60 = vld [vmem:[%s1599_s5 + $0x30] sm:$0xff] }
  0x13   :  { %995 = vmatprep.subr.bf16.mxu1 %v1131_v3  ;;  %v1014_v59 = vpack.c.bf16 %v245_v58, %v244_v57  ;;  %v247_v61 = vld [vmem:[%s1599_s5 + $0x38] sm:$0xff]  ;;  %v248_v63 = vld [vmem:[%s1599_s5 + $0x40] sm:$0xff]  ;;  %v249_v0 = vld [vmem:[%s1599_s5 + $0x48] sm:$0xff] }
  0x14   :  { %973 = vmatpush3.bf16.msra.mxu0 %v972_v27  ;;  %v1017_v62 = vpack.c.bf16 %v247_v61, %v246_v60  ;;  %v1020_v1 = vpack.c.bf16 %v249_v0, %v248_v63  ;;  %v250_v2 = vld [vmem:[%s1599_s5 + $0x50] sm:$0xff]  ;;  %v251_v4 = vld [vmem:[%s1599_s5 + $0x58] sm:$0xff]  ;;  %v252_v7 = vld [vmem:[%s1599_s5 + $0x60] sm:$0xff] }
  0x15   :  { %974 = vmatprep.subr.bf16.mxu0 %v1131_v3  ;;  %v1023_v5 = vpack.c.bf16 %v251_v4, %v250_v2  ;;  %v253_v8 = vld [vmem:[%s1599_s5 + $0x68] sm:$0xff]  ;;  %v641_v10 = vld [vmem:[%s1596_s2] ss:$0 sm:$0xff]  ;;  %v254_v16 = vld [vmem:[%s1599_s5 + $0x70] sm:$0xff] }
  0x16   :  { %997 = vmatpush3.bf16.msra.mxu1 %v996_v36  ;;  %v1026_v9 = vpack.c.bf16 %v253_v8, %v252_v7  ;;  %v255_v17 = vld [vmem:[%s1599_s5 + $0x78] sm:$0xff]  ;;  %v334_v19 = vld [vmem:[%s1601_s7] sm:$0xff]  ;;  %v335_v20 = vld [vmem:[%s1601_s7 + $0x8] sm:$0xff] }
  0x17   :  { %998 = vmatprep.subr.bf16.mxu1 %v1131_v3  ;;  %v1029_v18 = vpack.c.bf16 %v255_v17, %v254_v16  ;;  %v336_v21 = vld [vmem:[%s1601_s7 + $0x10] sm:$0xff]  ;;  %v1032_v22 = vpack.c.bf16 %v335_v20, %v334_v19  ;;  %v337_v23 = vld [vmem:[%s1601_s7 + $0x18] sm:$0xff]  ;;  %v338_v25 = vld [vmem:[%s1601_s7 + $0x20] sm:$0xff] }
  0x18   :  { %976 = vmatpush3.bf16.msra.mxu0 %v975_v33  ;;  %v1035_v24 = vpack.c.bf16 %v337_v23, %v336_v21  ;;  %v339_v26 = vld [vmem:[%s1601_s7 + $0x28] sm:$0xff]  ;;  %v340_v28 = vld [vmem:[%s1601_s7 + $0x30] sm:$0xff]  ;;  %v341_v29 = vld [vmem:[%s1601_s7 + $0x38] sm:$0xff] }
  0x19   :  { %977 = vmatprep.subr.bf16.mxu0 %v1131_v3  ;;  %v1038_v27 = vpack.c.bf16 %v339_v26, %v338_v25  ;;  %v1041_v30 = vpack.c.bf16 %v341_v29, %v340_v28  ;;  %v342_v31 = vld [vmem:[%s1601_s7 + $0x40] sm:$0xff]  ;;  %v343_v32 = vld [vmem:[%s1601_s7 + $0x48] sm:$0xff]  ;;  %v344_v34 = vld [vmem:[%s1601_s7 + $0x50] sm:$0xff] }
  0x1a   :  { %1000 = vmatpush3.bf16.msra.mxu1 %v999_v42  ;;  %v1044_v33 = vpack.c.bf16 %v343_v32, %v342_v31  ;;  %v345_v35 = vld [vmem:[%s1601_s7 + $0x58] sm:$0xff]  ;;  %v346_v37 = vld [vmem:[%s1601_s7 + $0x60] sm:$0xff]  ;;  %v347_v38 = vld [vmem:[%s1601_s7 + $0x68] sm:$0xff] }
  0x1b   :  { %1001 = vmatprep.subr.bf16.mxu1 %v1131_v3  ;;  %v1047_v36 = vpack.c.bf16 %v345_v35, %v344_v34  ;;  %v642_v40 = vld [vmem:[%s1598_s4] ss:$0 sm:$0xff]  ;;  %v432_v51 = vld [vmem:[%s1603_s9 + $0x10] sm:$0xff]  ;;  %v433_v53 = vld [vmem:[%s1603_s9 + $0x18] sm:$0xff] }
  0x1c   :  { %979 = vmatpush3.bf16.msra.mxu0 %v978_v39  ;;  %v1050_v39 = vpack.c.bf16 %v347_v38, %v346_v37  ;;  %v430_v49 = vld [vmem:[%s1603_s9] sm:$0xff]  ;;  %v436_v58 = vld [vmem:[%s1603_s9 + $0x30] sm:$0xff]  ;;  %v527_v16 = vld [vmem:[%s1605_s11 + $0x8] sm:$0xff] }
  0x1d   :  { %980 = vmatprep.subr.bf16.mxu0 %v1131_v3  ;;  %v434_v55 = vld [vmem:[%s1603_s9 + $0x20] sm:$0xff]  ;;  %v440_v0 = vld [vmem:[%s1603_s9 + $0x50] sm:$0xff]  ;;  %v531_v21 = vld [vmem:[%s1605_s11 + $0x28] sm:$0xff] }
  0x1e   :  { %1003 = vmatpush3.bf16.msra.mxu1 %v1002_v46  ;;  %v348_v46 = vld [vmem:[%s1601_s7 + $0x70] sm:$0xff]  ;;  %v438_v61 = vld [vmem:[%s1603_s9 + $0x40] sm:$0xff] }
  0x1f   :  { %1004 = vmatprep.subr.bf16.mxu1 %v1131_v3  ;;  %v442_v4 = vld [vmem:[%s1603_s9 + $0x60] sm:$0xff]  ;;  %v532_v23 = vld [vmem:[%s1605_s11 + $0x30] sm:$0xff] }
  0x20   :  { %982 = vmatpush3.bf16.msra.mxu0 %v981_v45  ;;  %v643_v8 = vld [vmem:[%s1600_s6] ss:$0 sm:$0xff]  ;;  %v536_v29 = vld [vmem:[%s1605_s11 + $0x50] sm:$0xff] }
  0x21   :  { %1007 = vmatprep.subr.bf16.mxu0 %v1131_v3  ;;  %v530_v20 = vld [vmem:[%s1605_s11 + $0x20] sm:$0xff] }
  0x22   :  { %1006 = vmatpush3.bf16.msra.mxu1 %v1005_v50  ;;  %v431_v50 = vld [vmem:[%s1603_s9 + $0x8] sm:$0xff]  ;;  %v534_v26 = vld [vmem:[%s1605_s11 + $0x40] sm:$0xff] }
  0x23   :  { %782 = vmatmul.mubr.f32.vlgmr.msra.gmra.mrb[0].mxu0 %v47_v47  ;;  %1031 = vmatprep.subr.bf16.mxu1 %v1131_v3  ;;  %v349_v47 = vld [vmem:[%s1601_s7 + $0x78] sm:$0xff]  ;;  %v1056_v52 = vpack.c.bf16 %v431_v50, %v430_v49  ;;  %v538_v32 = vld [vmem:[%s1605_s11 + $0x60] sm:$0xff] }
  0x24   :  { %851 = vmatprep.mubr.msk.f32.mxu0 %vm1132_vm0, %v1133_v6  ;;  %1009 = vmatpush3.bf16.msra.mxu0 %v1008_v54  ;;  %v1053_v48 = vpack.c.bf16 %v349_v47, %v348_v46  ;;  %v1059_v54 = vpack.c.bf16 %v433_v53, %v432_v51  ;;  %v644_v35 = vld [vmem:[%s1602_s8] ss:$0 sm:$0xff] }
  0x25   :  { %1010 = vmatprep.subr.bf16.mxu0 %v1131_v3  ;;  %v646_v49 = vld [vmem:[%s1606_s12] ss:$0 sm:$0xff] }
  0x28   :  { %1012 = vmatpush3.bf16.msra.mxu0 %v1011_v56  ;;  %v435_v56 = vld [vmem:[%s1603_s9 + $0x28] sm:$0xff] }
  0x29   :  { %1013 = vmatprep.subr.bf16.mxu0 %v1131_v3  ;;  %v1062_v57 = vpack.c.bf16 %v435_v56, %v434_v55 }
  0x2c   :  { %1015 = vmatpush3.bf16.msra.mxu0 %v1014_v59  ;;  %v437_v59 = vld [vmem:[%s1603_s9 + $0x38] sm:$0xff] }
  0x2d   :  { %1016 = vmatprep.subr.bf16.mxu0 %v1131_v3  ;;  %v1065_v60 = vpack.c.bf16 %v437_v59, %v436_v58 }
  0x30   :  { %1018 = vmatpush3.bf16.msra.mxu0 %v1017_v62  ;;  %v439_v62 = vld [vmem:[%s1603_s9 + $0x48] sm:$0xff] }
  0x31   :  { %1019 = vmatprep.subr.bf16.mxu0 %v1131_v3  ;;  %v1068_v63 = vpack.c.bf16 %v439_v62, %v438_v61 }
  0x34   :  { %1021 = vmatpush3.bf16.msra.mxu0 %v1020_v1  ;;  %v441_v1 = vld [vmem:[%s1603_s9 + $0x58] sm:$0xff] }
  0x35   :  { %1022 = vmatprep.subr.bf16.mxu0 %v1131_v3  ;;  %v1071_v2 = vpack.c.bf16 %v441_v1, %v440_v0 }
  0x38   :  { %1024 = vmatpush3.bf16.msra.mxu0 %v1023_v5  ;;  %v443_v5 = vld [vmem:[%s1603_s9 + $0x68] sm:$0xff] }
  0x39   :  { %1025 = vmatprep.subr.bf16.mxu0 %v1131_v3  ;;  %v1074_v7 = vpack.c.bf16 %v443_v5, %v442_v4 }
  0x3c   :  { %1027 = vmatpush3.bf16.msra.mxu0 %v1026_v9 }
  0x3d   :  { %1028 = vmatprep.subr.bf16.mxu0 %v1131_v3 }
  0x40   :  { %1030 = vmatpush3.bf16.msra.mxu0 %v1029_v18  ;;  %v529_v18 = vld [vmem:[%s1605_s11 + $0x18] sm:$0xff] }
  0x41   :  { %1055 = vmatprep.subr.bf16.mxu0 %v1131_v3 }
  0xf6   :  { %v137_v11 = vpop.f32.mrb[0].mxu0 }
  0xf7   :  { %v138_v12 = vadd.f32 %v641_v10, %v137_v11  ;;  %v783_v13 = vpop.f32.mrb[1].mxu0 }
  0xf8   :  { %v445_v13 = vld [vmem:[%s1603_s9 + $0x78] sm:$0xff] }
  0xf9   :  { %v142_v14 = vmul.f32 0.01, %v138_v12  ;;  %vm141_vm1 = vcmp.ge.f32.partialorder %v138_v12, 0.0 }
  0xfb   :  { %v143_v15 = vsel %vm141_vm1, %v138_v12, %v142_v14  ;;  %v444_v12 = vld [vmem:[%s1603_s9 + $0x70] sm:$0xff] }
  0xfc   :  { %817 = vmatmul.mubr.f32.vlgmr.msra.gmra.mrb[0].mxu1 %v143_v15  ;;  %v1077_v14 = vpack.c.bf16 %v445_v13, %v444_v12  ;;  %v526_v15 = vld [vmem:[%s1605_s11] sm:$0xff] }
  0xfd   :  { %886 = vmatprep.mubr.msk.f32.mxu1 %vm1132_vm0, %v1133_v6  ;;  %1033 = vmatpush3.bf16.msra.mxu1 %v1032_v22  ;;  %v1080_v17 = vpack.c.bf16 %v527_v16, %v526_v15  ;;  %v1086_v22 = vpack.c.bf16 %v531_v21, %v530_v20 }
  0xfe   :  { %1034 = vmatprep.subr.bf16.mxu1 %v1131_v3 }
 0x101   :  { %1036 = vmatpush3.bf16.msra.mxu1 %v1035_v24  ;;  %v533_v24 = vld [vmem:[%s1605_s11 + $0x38] sm:$0xff] }
 0x102   :  { %1037 = vmatprep.subr.bf16.mxu1 %v1131_v3  ;;  %v1089_v25 = vpack.c.bf16 %v533_v24, %v532_v23 }
 0x105   :  { %1039 = vmatpush3.bf16.msra.mxu1 %v1038_v27  ;;  %v535_v27 = vld [vmem:[%s1605_s11 + $0x48] sm:$0xff] }
 0x106   :  { %1040 = vmatprep.subr.bf16.mxu1 %v1131_v3  ;;  %v1092_v28 = vpack.c.bf16 %v535_v27, %v534_v26 }
 0x109   :  { %1042 = vmatpush3.bf16.msra.mxu1 %v1041_v30  ;;  %v537_v30 = vld [vmem:[%s1605_s11 + $0x58] sm:$0xff] }
 0x10a   :  { %1043 = vmatprep.subr.bf16.mxu1 %v1131_v3  ;;  %v1095_v31 = vpack.c.bf16 %v537_v30, %v536_v29 }
 0x10d   :  { %1045 = vmatpush3.bf16.msra.mxu1 %v1044_v33  ;;  %v539_v33 = vld [vmem:[%s1605_s11 + $0x68] sm:$0xff] }
 0x10e   :  { %1046 = vmatprep.subr.bf16.mxu1 %v1131_v3  ;;  %v1098_v34 = vpack.c.bf16 %v539_v33, %v538_v32 }
 0x111   :  { %1048 = vmatpush3.bf16.msra.mxu1 %v1047_v36 }
 0x112   :  { %1049 = vmatprep.subr.bf16.mxu1 %v1131_v3 }
 0x115   :  { %1051 = vmatpush3.bf16.msra.mxu1 %v1050_v39 }
 0x116   :  { %1052 = vmatprep.subr.bf16.mxu1 %v1131_v3 }
 0x119   :  { %1054 = vmatpush3.bf16.msra.mxu1 %v1053_v48 }
 0x11a   :  { %1079 = vmatprep.subr.bf16.mxu1 %v1131_v3 }
 0x1cf   :  { %v233_v41 = vpop.f32.mrb[0].mxu1 }
 0x1d0   :  { %v234_v42 = vadd.f32 %v642_v40, %v233_v41  ;;  %v818_v43 = vpop.f32.mrb[1].mxu1  ;;  %v540_v41 = vld [vmem:[%s1605_s11 + $0x70] sm:$0xff] }
 0x1d1   :  { %v645_v43 = vld [vmem:[%s1604_s10] ss:$0 sm:$0xff] }
 0x1d2   :  { %vm237_vm2 = vcmp.ge.f32.partialorder %v234_v42, 0.0  ;;  %v238_v44 = vmul.f32 0.01, %v234_v42 }
 0x1d4   :  { %v239_v45 = vsel %vm237_vm2, %v234_v42, %v238_v44  ;;  %v541_v42 = vld [vmem:[%s1605_s11 + $0x78] sm:$0xff] }
 0x1d5   :  { %852 = vmatmul.mubr.f32.vlgmr.msra.gmra.mrb[2].mxu0 %v239_v45 }
 0x1d6   :  { %921 = vmatprep.mubr.msk.f32.mxu0 %vm1132_vm0, %v1133_v6  ;;  %1057 = vmatpush3.bf16.msra.mxu0 %v1056_v52 }
 0x1d7   :  { %1058 = vmatprep.subr.bf16.mxu0 %v1131_v3 }
 0x1da   :  { %1060 = vmatpush3.bf16.msra.mxu0 %v1059_v54 }
 0x1db   :  { %1061 = vmatprep.subr.bf16.mxu0 %v1131_v3 }
 0x1de   :  { %1063 = vmatpush3.bf16.msra.mxu0 %v1062_v57 }
 0x1df   :  { %1064 = vmatprep.subr.bf16.mxu0 %v1131_v3 }
 0x1e2   :  { %1066 = vmatpush3.bf16.msra.mxu0 %v1065_v60 }
 0x1e3   :  { %1067 = vmatprep.subr.bf16.mxu0 %v1131_v3 }
 0x1e6   :  { %1069 = vmatpush3.bf16.msra.mxu0 %v1068_v63 }
 0x1e7   :  { %1070 = vmatprep.subr.bf16.mxu0 %v1131_v3 }
 0x1ea   :  { %1072 = vmatpush3.bf16.msra.mxu0 %v1071_v2 }
 0x1eb   :  { %1073 = vmatprep.subr.bf16.mxu0 %v1131_v3 }
 0x1ee   :  { %1075 = vmatpush3.bf16.msra.mxu0 %v1074_v7 }
 0x1ef   :  { %1076 = vmatprep.subr.bf16.mxu0 %v1131_v3 }
 0x1f2   :  { %1078 = vmatpush3.bf16.msra.mxu0 %v1077_v14 }
 0x2a8   :  { %v329_v9 = vpop.f32.mrb[2].mxu0 }
 0x2a9   :  { %v330_v10 = vadd.f32 %v643_v8, %v329_v9  ;;  %v853_v11 = vpop.f32.mrb[3].mxu0 }
 0x2ab   :  { %333 = vst [vmem:[%s1608_s14] sm:$0xff] %v330_v10  ;;  %887 = vmatmul.mubr.f32.vlgmr.msra.gmra.mrb[2].mxu1 %v330_v10 }
 0x2ac   :  { %956 = vmatprep.mubr.msk.f32.mxu1 %vm1132_vm0, %v1133_v6  ;;  %v528_v6 = vld [vmem:[%s1605_s11 + $0x10] sm:$0xff]  ;;  %1081 = vmatpush3.bf16.msra.mxu1 %v1080_v17  ;;  %s1134_s11 = smov [#allocation2]  }
 0x2ad   :  { %v1083_v19 = vpack.c.bf16 %v529_v18, %v528_v6  ;;  %1082 = vmatprep.subr.bf16.mxu1 %v1131_v3  ;;  %s629_s18 = sshll.u32 %s1134_s11, 4  ;;  %s630_s18 = int_to_ptr.vmem [resolvable:$true] %s629_s18 }
 0x2ae   :  { %s1107_s10 = scalar_lea.vmem %s630_s18, 128  ;;  %p1112_p1 = scmp.lt.s32.totalorder %s630_s18, %s630_s18 }
 0x2af   :  { %p1108_p0 = scmp.ne.s32.totalorder %s630_s18, %s1107_s10  ;;  %p1113_p2 = scmp.lt.s32.totalorder %s1107_s10, %s1107_s10 }
 0x2b0   :  { %1084 = vmatpush3.bf16.msra.mxu1 %v1083_v19 }
 0x2b1   :  { %1085 = vmatprep.subr.bf16.mxu1 %v1131_v3  ;;  %p1114_p3 = por %p1113_p2, %p1112_p1 }
 0x2b3   :  { %p1115_p4 = pnand %p1114_p3, %p1108_p0 }
 0x2b4   :  { %1087 = vmatpush3.bf16.msra.mxu1 %v1086_v22 }
 0x2b5   :  { %1088 = vmatprep.subr.bf16.mxu1 %v1131_v3 }
 0x2b8   :  { %1090 = vmatpush3.bf16.msra.mxu1 %v1089_v25 }
 0x2b9   :  { %1091 = vmatprep.subr.bf16.mxu1 %v1131_v3 }
 0x2bc   :  { %1093 = vmatpush3.bf16.msra.mxu1 %v1092_v28 }
 0x2bd   :  { %1094 = vmatprep.subr.bf16.mxu1 %v1131_v3 }
 0x2c0   :  { %1096 = vmatpush3.bf16.msra.mxu1 %v1095_v31 }
 0x2c1   :  { %1097 = vmatprep.subr.bf16.mxu1 %v1131_v3 }
 0x2c4   :  { %1099 = vmatpush3.bf16.msra.mxu1 %v1098_v34 }
 0x2c5   :  { %1100 = vmatprep.subr.bf16.mxu1 %v1131_v3  ;;  %v1101_v3 = vpack.c.bf16 %v541_v42, %v540_v41 }
 0x2c8   :  { %1102 = vmatpush3.bf16.msra.mxu1 %v1101_v3 }
 0x37e   :  { %v423_v36 = vpop.f32.mrb[2].mxu1 }
 0x37f   :  { %v424_v37 = vadd.f32 %v644_v35, %v423_v36  ;;  %v888_v38 = vpop.f32.mrb[3].mxu1 }
 0x381   :  { %vm427_vm3 = vcmp.ge.f32.partialorder %v424_v37, 0.0  ;;  %v428_v39 = vmul.f32 0.01, %v424_v37 }
 0x383   :  { %v429_v40 = vsel %vm427_vm3, %v424_v37, %v428_v39 }
 0x384   :  { %922 = vmatmul.mubr.f32.vlgmr.msra.gmra.mrb[4].mxu0 %v429_v40 }
 0x457   :  { %v519_v44 = vpop.f32.mrb[4].mxu0 }
 0x458   :  { %v520_v45 = vadd.f32 %v645_v43, %v519_v44  ;;  %v923_v46 = vpop.f32.mrb[5].mxu0 }
 0x45a   :  { %vm523_vm4 = vcmp.ge.f32.partialorder %v520_v45, 0.0  ;;  %v524_v47 = vmul.f32 0.01, %v520_v45 }
 0x45c   :  { %v525_v48 = vsel %vm523_vm4, %v520_v45, %v524_v47 }
 0x45d   :  { %957 = vmatmul.mubr.f32.vlgmr.msra.gmra.mrb[4].mxu1 %v525_v48 }
 0x530   :  { %v615_v50 = vpop.f32.mrb[4].mxu1 }
 0x531   :  { %v616_v51 = vadd.f32 %v646_v49, %v615_v50  ;;  %v958_v52 = vpop.f32.mrb[5].mxu1 }
 0x533   :  { %v620_v53 = vmul.f32 0.1, %v616_v51  ;;  %vm619_vm5 = vcmp.ge.f32.partialorder %v616_v51, 0.0 }
 0x535   :  { %v621_v54 = vsel %vm619_vm5, %v616_v51, %v620_v53 }
 0x536   :  { %622 = vst [vmem:[#allocation2] sm:$0xff] %v621_v54 }
 0x537   :  { %1118 = shalt.err (!%p1115_p4)
}
 0x538   :  { %s1119_s12 = scalar_lea.hbm %s1607_s13, 128 }
 0x539   :  { %p1120_p5 = scmp.ne.s32.totalorder %s1607_s13, %s1119_s12  ;;  %p1123_p6 = scmp.lt.u32.totalorder %s1119_s12, %s1607_s13 }
 0x53b   :  { %p1125_p7 = pnand %p1123_p6, %p1120_p5 }
 0x53d   :  { %1128 = shalt.err (!%p1125_p7)
}
 0x53e   :  { %632 = dma.vmem_to_hbm [thread:$0]  %s630_s18, 128, %s1607_s13, [#allocation3]  }
 0x53f   :  { %1129 = dma.done.wait [#allocation3], 128  }
 0x540   :  { %1130 = vsyncadd [#allocation3], 4294967168 }
 0x541   :  { %640 = vsyncpa [#allocation3], 1 }

</bundles_post_ra>
